<compile_context>
chip_gen: v6e
topology: v6e:2x2x1
jax: 0.10.0
libtpu: 0.0.40
codegen_flags: <defaults>
</compile_context>

<pallas_src>
import jax
import jax.numpy as jnp
import numpy as np
from jax.experimental import pallas as pl
from jax.experimental.pallas import tpu as pltpu

HIDDEN = 128
LANE = 128
SUBLANE = 8


def _round_up(x, m):
    return ((x + m - 1) // m) * m


def mlp_kernel(x_ref,
               w1_ref, b1_ref,
               w2_ref, b2_ref,
               w3_ref, b3_ref,
               w4_ref, b4_ref,
               o_ref):
    """Fused 4-layer MLP on one batch tile.

    x_ref: (TB, in_dim) bf16; weights bf16; biases f32; o_ref: (TB, OUT_PAD) f32.
    All dots are bf16 x bf16 -> f32 accumulate; elementwise stays in f32.
    """
    h = jnp.dot(x_ref[...], w1_ref[...], preferred_element_type=jnp.float32) + b1_ref[...]
    h = jnp.maximum(h, 0.0)

    h = jnp.dot(h.astype(jnp.bfloat16), w2_ref[...], preferred_element_type=jnp.float32) + b2_ref[...]
    h = jnp.maximum(h, 0.0)

    h = jnp.dot(h.astype(jnp.bfloat16), w3_ref[...], preferred_element_type=jnp.float32) + b3_ref[...]
    h = jnp.maximum(h, 0.0)

    out = jnp.dot(h.astype(jnp.bfloat16), w4_ref[...], preferred_element_type=jnp.float32) + b4_ref[...]
    o_ref[...] = out  # lane-dense f32 store (OUT_PAD = multiple of 128)


def example_net2_forward(obs, params):
    """obs: (batch, ...) -> flattened to (batch, in_dim). Returns (logits, state=None)."""
    batch = obs.shape[0]
    x = obs.reshape(batch, -1).astype(jnp.float32)
    in_dim = x.shape[1]
    (w1, b1), (w2, b2), (w3, b3), (w4, b4) = params
    out_dim = w4.shape[1]

    # --- padding for TPU tiling ---
    out_pad = _round_up(max(out_dim, LANE), LANE)          # lane-dense output
    tb = 256 if batch >= 256 else _round_up(batch, SUBLANE)  # batch tile
    batch_pad = _round_up(batch, tb)
    grid = (batch_pad // tb,)

    x_p = jnp.pad(x, ((0, batch_pad - batch), (0, 0))).astype(jnp.bfloat16)
    w1b, w2b, w3b = (w.astype(jnp.bfloat16) for w in (w1, w2, w3))
    w4_p = jnp.pad(w4, ((0, 0), (0, out_pad - out_dim))).astype(jnp.bfloat16)
    b4_p = jnp.pad(b4, ((0, 0), (0, out_pad - out_dim)))

    def resident(shape):
        # whole-array block, same block index for every grid step -> no re-DMA
        return pl.BlockSpec(shape, lambda i: (0, 0))

    in_specs = [
        pl.BlockSpec((tb, in_dim), lambda i: (i, 0)),       # activations: tiled over batch
        resident((in_dim, HIDDEN)), resident((1, HIDDEN)),
        resident((HIDDEN, HIDDEN)), resident((1, HIDDEN)),
        resident((HIDDEN, HIDDEN)), resident((1, HIDDEN)),
        resident((HIDDEN, out_pad)), resident((1, out_pad)),
    ]
    out_specs = pl.BlockSpec((tb, out_pad), lambda i: (i, 0))

    flops = 2 * batch_pad * (in_dim * HIDDEN + 2 * HIDDEN * HIDDEN + HIDDEN * out_pad)
    weight_bytes = 2 * (in_dim * HIDDEN + 2 * HIDDEN * HIDDEN + HIDDEN * out_pad)  # bf16
    bias_bytes = 4 * (3 * HIDDEN + out_pad)                                        # f32
    io_bytes = 2 * batch_pad * in_dim + 4 * batch_pad * out_pad                    # bf16 in, f32 out
    cost = pl.CostEstimate(flops=flops, transcendentals=0,
                           bytes_accessed=weight_bytes + bias_bytes + io_bytes)

    logits_pad = pl.pallas_call(
        mlp_kernel,
        out_shape=jax.ShapeDtypeStruct((batch_pad, out_pad), jnp.float32),
        grid=grid,
        in_specs=in_specs,
        out_specs=out_specs,
        compiler_params=pltpu.CompilerParams(dimension_semantics=("parallel",)),
        cost_estimate=cost,
    )(x_p, w1b, b1, w2b, b2, w3b, b3, w4_p, b4_p)

    logits = logits_pad[:batch, :out_dim]
    return logits, None


def init_params(key, in_dim, out_dim):
    """Deterministic init mirroring PyTorch Linear's U(-1/sqrt(fan_in), 1/sqrt(fan_in))."""
    dims = [(in_dim, HIDDEN), (HIDDEN, HIDDEN), (HIDDEN, HIDDEN), (HIDDEN, out_dim)]
    params = []
    for (fan_in, fan_out) in dims:
        key, kw, kb = jax.random.split(key, 3)
        bound = 1.0 / np.sqrt(fan_in)
        w = jax.random.uniform(kw, (fan_in, fan_out), jnp.float32, -bound, bound)
        b = jax.random.uniform(kb, (1, fan_out), jnp.float32, -bound, bound)
        params.append((w, b))
    return params


def _reference_forward(obs, params):
    """Pure-JAX reference with identical bf16/f32 dtype handling as the kernel."""
    batch = obs.shape[0]
    h = obs.reshape(batch, -1).astype(jnp.bfloat16)
    for i, (w, b) in enumerate(params):
        h = jnp.dot(h, w.astype(jnp.bfloat16), preferred_element_type=jnp.float32) + b
        if i < 3:
            h = jnp.maximum(h, 0.0)
            h = h.astype(jnp.bfloat16)
        # note: kernel casts to bf16 only right before the next dot; the f32
        # accumulate + f32 bias/ReLU path above is the same except the final
        # pre-dot cast, which we mirror here by casting post-ReLU.
    return h


if __name__ == "__main__":
    # Small shapes consistent with the module: state_shape=(4, 4) -> in_dim=16,
    # action_shape=(4,) -> out_dim=4, batch=2.
    state_shape = (4, 4)
    action_shape = (4,)
    batch = 2
    in_dim = int(np.prod(state_shape))
    out_dim = int(np.prod(action_shape))

    key = jax.random.PRNGKey(0)
    key, k_obs = jax.random.split(key)
    obs = jax.random.normal(k_obs, (batch,) + state_shape, jnp.float32)
    params = init_params(key, in_dim, out_dim)

    logits, state = example_net2_forward(obs, params)
    logits = jax.block_until_ready(logits)

    ref = _reference_forward(obs, params)
    np.testing.assert_allclose(np.asarray(logits), np.asarray(ref), rtol=2e-2, atol=2e-2)

    assert logits.shape == (batch, out_dim)
    assert state is None
    print("KERNEL_OK")
</pallas_src>

<mosaic_0001>
module attributes {stable_mosaic.version = 11 : i64} {
  func.func @mlp_kernel(%arg0: i32, %arg1: memref<8x16xbf16, #tpu.memory_space<vmem>>, %arg2: memref<16x128xbf16, #tpu.memory_space<vmem>>, %arg3: memref<1x128xf32, #tpu.memory_space<vmem>>, %arg4: memref<128x128xbf16, #tpu.memory_space<vmem>>, %arg5: memref<1x128xf32, #tpu.memory_space<vmem>>, %arg6: memref<128x128xbf16, #tpu.memory_space<vmem>>, %arg7: memref<1x128xf32, #tpu.memory_space<vmem>>, %arg8: memref<128x128xbf16, #tpu.memory_space<vmem>>, %arg9: memref<1x128xf32, #tpu.memory_space<vmem>>, %arg10: memref<8x128xf32, #tpu.memory_space<vmem>>) attributes {dimension_semantics = [#tpu.dimension_semantics<parallel>], iteration_bounds = array<i64: 1>, scalar_prefetch = 0 : i64, scratch_operands = 0 : i64, tpu.core_type = #tpu.core_type<tc>, window_params = [{transform_indices = @transform_0, window_bounds = array<i64: 8, 16>}, {pipeline_mode = #tpu.pipeline_mode<synchronous>, transform_indices = @transform_1, window_bounds = array<i64: 16, 128>}, {pipeline_mode = #tpu.pipeline_mode<synchronous>, transform_indices = @transform_2, window_bounds = array<i64: 1, 128>}, {pipeline_mode = #tpu.pipeline_mode<synchronous>, transform_indices = @transform_3, window_bounds = array<i64: 128, 128>}, {pipeline_mode = #tpu.pipeline_mode<synchronous>, transform_indices = @transform_4, window_bounds = array<i64: 1, 128>}, {pipeline_mode = #tpu.pipeline_mode<synchronous>, transform_indices = @transform_5, window_bounds = array<i64: 128, 128>}, {pipeline_mode = #tpu.pipeline_mode<synchronous>, transform_indices = @transform_6, window_bounds = array<i64: 1, 128>}, {pipeline_mode = #tpu.pipeline_mode<synchronous>, transform_indices = @transform_7, window_bounds = array<i64: 128, 128>}, {pipeline_mode = #tpu.pipeline_mode<synchronous>, transform_indices = @transform_8, window_bounds = array<i64: 1, 128>}, {transform_indices = @transform_9, window_bounds = array<i64: 8, 128>}]} {
    %c0 = arith.constant 0 : index
    %c0_0 = arith.constant 0 : index
    %0 = vector.load %arg1[%c0, %c0_0] : memref<8x16xbf16, #tpu.memory_space<vmem>>, vector<8x16xbf16>
    %c0_1 = arith.constant 0 : index
    %c0_2 = arith.constant 0 : index
    %1 = vector.load %arg2[%c0_1, %c0_2] : memref<16x128xbf16, #tpu.memory_space<vmem>>, vector<16x128xbf16>
    %cst = arith.constant dense<0.000000e+00> : vector<8x128xf32>
    %2 = tpu.matmul %0, %1, %cst {dimension_numbers = #tpu.dot_dimension_numbers<[1], [0], [0], [1], [0, 0, 1, 1], [], []>} : vector<8x16xbf16>, vector<16x128xbf16>, vector<8x128xf32> -> vector<8x128xf32>
    %c0_3 = arith.constant 0 : index
    %c0_4 = arith.constant 0 : index
    %3 = vector.load %arg3[%c0_3, %c0_4] : memref<1x128xf32, #tpu.memory_space<vmem>>, vector<1x128xf32>
    %4 = vector.broadcast %3 : vector<1x128xf32> to vector<8x128xf32>
    %5 = arith.addf %2, %4 : vector<8x128xf32>
    %cst_5 = arith.constant 0.000000e+00 : f32
    %6 = vector.broadcast %cst_5 : f32 to vector<8x128xf32>
    %7 = arith.maximumf %5, %6 : vector<8x128xf32>
    %8 = arith.truncf %7 : vector<8x128xf32> to vector<8x128xbf16>
    %c0_6 = arith.constant 0 : index
    %c0_7 = arith.constant 0 : index
    %9 = vector.load %arg4[%c0_6, %c0_7] : memref<128x128xbf16, #tpu.memory_space<vmem>>, vector<128x128xbf16>
    %cst_8 = arith.constant dense<0.000000e+00> : vector<8x128xf32>
    %10 = tpu.matmul %8, %9, %cst_8 {dimension_numbers = #tpu.dot_dimension_numbers<[1], [0], [0], [1], [0, 0, 1, 1], [], []>} : vector<8x128xbf16>, vector<128x128xbf16>, vector<8x128xf32> -> vector<8x128xf32>
    %c0_9 = arith.constant 0 : index
    %c0_10 = arith.constant 0 : index
    %11 = vector.load %arg5[%c0_9, %c0_10] : memref<1x128xf32, #tpu.memory_space<vmem>>, vector<1x128xf32>
    %12 = vector.broadcast %11 : vector<1x128xf32> to vector<8x128xf32>
    %13 = arith.addf %10, %12 : vector<8x128xf32>
    %cst_11 = arith.constant 0.000000e+00 : f32
    %14 = vector.broadcast %cst_11 : f32 to vector<8x128xf32>
    %15 = arith.maximumf %13, %14 : vector<8x128xf32>
    %16 = arith.truncf %15 : vector<8x128xf32> to vector<8x128xbf16>
    %c0_12 = arith.constant 0 : index
    %c0_13 = arith.constant 0 : index
    %17 = vector.load %arg6[%c0_12, %c0_13] : memref<128x128xbf16, #tpu.memory_space<vmem>>, vector<128x128xbf16>
    %cst_14 = arith.constant dense<0.000000e+00> : vector<8x128xf32>
    %18 = tpu.matmul %16, %17, %cst_14 {dimension_numbers = #tpu.dot_dimension_numbers<[1], [0], [0], [1], [0, 0, 1, 1], [], []>} : vector<8x128xbf16>, vector<128x128xbf16>, vector<8x128xf32> -> vector<8x128xf32>
    %c0_15 = arith.constant 0 : index
    %c0_16 = arith.constant 0 : index
    %19 = vector.load %arg7[%c0_15, %c0_16] : memref<1x128xf32, #tpu.memory_space<vmem>>, vector<1x128xf32>
    %20 = vector.broadcast %19 : vector<1x128xf32> to vector<8x128xf32>
    %21 = arith.addf %18, %20 : vector<8x128xf32>
    %cst_17 = arith.constant 0.000000e+00 : f32
    %22 = vector.broadcast %cst_17 : f32 to vector<8x128xf32>
    %23 = arith.maximumf %21, %22 : vector<8x128xf32>
    %24 = arith.truncf %23 : vector<8x128xf32> to vector<8x128xbf16>
    %c0_18 = arith.constant 0 : index
    %c0_19 = arith.constant 0 : index
    %25 = vector.load %arg8[%c0_18, %c0_19] : memref<128x128xbf16, #tpu.memory_space<vmem>>, vector<128x128xbf16>
    %cst_20 = arith.constant dense<0.000000e+00> : vector<8x128xf32>
    %26 = tpu.matmul %24, %25, %cst_20 {dimension_numbers = #tpu.dot_dimension_numbers<[1], [0], [0], [1], [0, 0, 1, 1], [], []>} : vector<8x128xbf16>, vector<128x128xbf16>, vector<8x128xf32> -> vector<8x128xf32>
    %c0_21 = arith.constant 0 : index
    %c0_22 = arith.constant 0 : index
    %27 = vector.load %arg9[%c0_21, %c0_22] : memref<1x128xf32, #tpu.memory_space<vmem>>, vector<1x128xf32>
    %28 = vector.broadcast %27 : vector<1x128xf32> to vector<8x128xf32>
    %29 = arith.addf %26, %28 : vector<8x128xf32>
    %c0_23 = arith.constant 0 : index
    %c0_24 = arith.constant 0 : index
    %30 = vector.load %arg10[%c0_23, %c0_24] : memref<8x128xf32, #tpu.memory_space<vmem>>, vector<8x128xf32>
    tpu.vector_store %arg10[%c0_23, %c0_24], %29 {strides = array<i32>} : memref<8x128xf32, #tpu.memory_space<vmem>>, vector<8x128xf32>,
    return
  }
  func.func @transform_0(%arg0: i32) -> (i32, i32) {
    %c0_i32 = arith.constant 0 : i32
    %c0_i32_0 = arith.constant 0 : i32
    return %arg0, %c0_i32 : i32, i32
  }
  func.func @transform_1(%arg0: i32) -> (i32, i32) {
    %c0_i32 = arith.constant 0 : i32
    %c0_i32_0 = arith.constant 0 : i32
    %c0_i32_1 = arith.constant 0 : i32
    return %c0_i32, %c0_i32_0 : i32, i32
  }
  func.func @transform_2(%arg0: i32) -> (i32, i32) {
    %c0_i32 = arith.constant 0 : i32
    %c0_i32_0 = arith.constant 0 : i32
    %c0_i32_1 = arith.constant 0 : i32
    return %c0_i32, %c0_i32_0 : i32, i32
  }
  func.func @transform_3(%arg0: i32) -> (i32, i32) {
    %c0_i32 = arith.constant 0 : i32
    %c0_i32_0 = arith.constant 0 : i32
    %c0_i32_1 = arith.constant 0 : i32
    return %c0_i32, %c0_i32_0 : i32, i32
  }
  func.func @transform_4(%arg0: i32) -> (i32, i32) {
    %c0_i32 = arith.constant 0 : i32
    %c0_i32_0 = arith.constant 0 : i32
    %c0_i32_1 = arith.constant 0 : i32
    return %c0_i32, %c0_i32_0 : i32, i32
  }
  func.func @transform_5(%arg0: i32) -> (i32, i32) {
    %c0_i32 = arith.constant 0 : i32
    %c0_i32_0 = arith.constant 0 : i32
    %c0_i32_1 = arith.constant 0 : i32
    return %c0_i32, %c0_i32_0 : i32, i32
  }
  func.func @transform_6(%arg0: i32) -> (i32, i32) {
    %c0_i32 = arith.constant 0 : i32
    %c0_i32_0 = arith.constant 0 : i32
    %c0_i32_1 = arith.constant 0 : i32
    return %c0_i32, %c0_i32_0 : i32, i32
  }
  func.func @transform_7(%arg0: i32) -> (i32, i32) {
    %c0_i32 = arith.constant 0 : i32
    %c0_i32_0 = arith.constant 0 : i32
    %c0_i32_1 = arith.constant 0 : i32
    return %c0_i32, %c0_i32_0 : i32, i32
  }
  func.func @transform_8(%arg0: i32) -> (i32, i32) {
    %c0_i32 = arith.constant 0 : i32
    %c0_i32_0 = arith.constant 0 : i32
    %c0_i32_1 = arith.constant 0 : i32
    return %c0_i32, %c0_i32_0 : i32, i32
  }
  func.func @transform_9(%arg0: i32) -> (i32, i32) {
    %c0_i32 = arith.constant 0 : i32
    %c0_i32_0 = arith.constant 0 : i32
    return %arg0, %c0_i32 : i32, i32
  }
}

</mosaic_0001>

<bundles_post_ra>
// kernel: tpu_custom_call.1
= control target key start
LH: loop header
LB: loop body
LE: loop exit
PB: predicated region body
PF: predicated region fallthrough
CT: control target
= control target key end

     0   :  { %14 = vsyncpa [#allocation3], 0  ;;  %s940_s0 = inlined_call_operand.hbm [shape: bf16[8,16], index: 0, kind: input, shape index: {}]   ;;  %s941_s1 = inlined_call_operand.hbm [shape: bf16[16,128], index: 1, kind: input, shape index: {}]   ;;  %s942_s2 = inlined_call_operand.vmem [shape: f32[1,128], index: 2, kind: input, shape index: {}]   ;;  %s943_s3 = inlined_call_operand.hbm [shape: bf16[128,128], index: 3, kind: input, shape index: {}]   ;;  %s944_s4 = inlined_call_operand.vmem [shape: f32[1,128], index: 4, kind: input, shape index: {}]   ;;  %s945_s5 = inlined_call_operand.hbm [shape: bf16[128,128], index: 5, kind: input, shape index: {}]   ;;  %s946_s6 = inlined_call_operand.vmem [shape: f32[1,128], index: 6, kind: input, shape index: {}]   ;;  %s947_s7 = inlined_call_operand.hbm [shape: bf16[128,128], index: 7, kind: input, shape index: {}]   ;;  %s948_s8 = inlined_call_operand.vmem [shape: f32[1,128], index: 8, kind: input, shape index: {}]   ;;  %s949_s9 = inlined_call_operand.hbm [shape: f32[8,128], index: 9, kind: output, shape index: {}]  }
   0x1   :  { %15 = vsyncpa [#allocation6], 0 }
   0x2   :  { %16 = vsyncpa [#allocation9], 0 }
   0x3   :  { %17 = vsyncpa [#allocation4], 0  ;;  %s805_s30 = smov [#allocation5]  }
   0x4   :  { %s33_s10 = sshll.u32 %s805_s30, 4  ;;  %s34_s10 = int_to_ptr.vmem [resolvable:$true] %s33_s10 }
   0x5   :  { %s685_s11 = scalar_lea.vmem %s34_s10, 128  ;;  %p690_p1 = scmp.lt.s32.totalorder %s34_s10, %s34_s10 }
   0x6   :  { %p686_p0 = scmp.ne.s32.totalorder %s34_s10, %s685_s11  ;;  %p691_p2 = scmp.lt.s32.totalorder %s685_s11, %s685_s11 }
   0x8   :  { %p692_p3 = por %p691_p2, %p690_p1 }
   0xa   :  { %p693_p4 = pnand %p692_p3, %p686_p0 }
   0xc   :  { %696 = shalt.err (!%p693_p4)
}
   0xd   :  { %s806_s12 = smov 64   ;;  %s807_s13 = smov 4  }
   0xe   :  { %39 = dma.hbm_to_vmem [thread:$0]  %s941_s1, 128, %s34_s10, [#allocation6], %s806_s12, %s806_s12, %s807_s13  }
   0xf   :  { %s808_s16 = smov [#allocation8]   ;;  %s809_s18 = smov [#allocation2]  }
  0x10   :  { %s61_s17 = sshll.u32 %s808_s16, 4  ;;  %s24_s19 = sshll.u32 %s809_s18, 4  ;;  %s62_s17 = int_to_ptr.vmem [resolvable:$true] %s61_s17  ;;  %s25_s19 = int_to_ptr.vmem [resolvable:$true] %s24_s19 }
  0x11   :  { %s705_s20 = scalar_lea.vmem %s62_s17, 1024  ;;  %p710_p6 = scmp.lt.s32.totalorder %s62_s17, %s62_s17 }
  0x12   :  { %p706_p5 = scmp.ne.s32.totalorder %s62_s17, %s705_s20  ;;  %p711_p7 = scmp.lt.s32.totalorder %s705_s20, %s705_s20 }
  0x14   :  { %p712_p8 = por %p711_p7, %p710_p6 }
  0x16   :  { %p713_p9 = pnand %p712_p8, %p706_p5 }
  0x18   :  { %716 = shalt.err (!%p713_p9)
}
  0x19   :  { %67 = dma.hbm_to_vmem [thread:$0]  %s945_s5, 1024, %s62_s17, [#allocation9], %s806_s12, %s806_s12, %s807_s13  }
  0x1a   :  { %s725_s1 = scalar_lea.vmem %s25_s19, 64  ;;  %p730_p11 = scmp.lt.s32.totalorder %s25_s19, %s25_s19 }
  0x1b   :  { %p726_p10 = scmp.ne.s32.totalorder %s25_s19, %s725_s1  ;;  %p731_p12 = scmp.lt.s32.totalorder %s725_s1, %s725_s1 }
  0x1d   :  { %p732_p13 = por %p731_p12, %p730_p11 }
  0x1f   :  { %p733_p0 = pnand %p732_p13, %p726_p10 }
  0x21   :  { %736 = shalt.err (!%p733_p0)
}
  0x22   :  { %27 = dma.hbm_to_vmem [thread:$0]  %s940_s0, 64, %s25_s19, [#allocation3]  }
  0x23   :  { %s810_s25 = smov [#allocation7]   ;;  %s811_s27 = smov [#allocation10]  }
  0x24   :  { %s47_s26 = sshll.u32 %s810_s25, 4  ;;  %s75_s28 = sshll.u32 %s811_s27, 4  ;;  %s48_s26 = int_to_ptr.vmem [resolvable:$true] %s47_s26  ;;  %s76_s28 = int_to_ptr.vmem [resolvable:$true] %s75_s28 }
  0x25   :  { %s745_s29 = scalar_lea.vmem %s48_s26, 1024  ;;  %p750_p2 = scmp.lt.s32.totalorder %s48_s26, %s48_s26 }
  0x26   :  { %p746_p1 = scmp.ne.s32.totalorder %s48_s26, %s745_s29  ;;  %p751_p3 = scmp.lt.s32.totalorder %s745_s29, %s745_s29 }
  0x28   :  { %p752_p4 = por %p751_p3, %p750_p2 }
  0x2a   :  { %p753_p5 = pnand %p752_p4, %p746_p1 }
  0x2c   :  { %756 = shalt.err (!%p753_p5)
}
  0x2d   :  { %53 = dma.hbm_to_vmem [thread:$0]  %s943_s3, 1024, %s48_s26, [#allocation6], %s806_s12, %s806_s12, %s807_s13  }
  0x2e   :  { %s765_s0 = scalar_lea.vmem %s76_s28, 1024  ;;  %p770_p7 = scmp.lt.s32.totalorder %s76_s28, %s76_s28 }
  0x2f   :  { %p766_p6 = scmp.ne.s32.totalorder %s76_s28, %s765_s0  ;;  %p771_p8 = scmp.lt.s32.totalorder %s765_s0, %s765_s0 }
  0x31   :  { %p772_p9 = por %p771_p8, %p770_p7 }
  0x33   :  { %p773_p10 = pnand %p772_p9, %p766_p6 }
  0x35   :  { %776 = shalt.err (!%p773_p10)
}
  0x36   :  { %81 = dma.hbm_to_vmem [thread:$0]  %s947_s7, 1024, %s76_s28, [#allocation9], %s806_s12, %s806_s12, %s807_s13  }
  0x37   :  { %797 = dma.done.wait [#allocation3], 64  }
  0x38   :  { %798 = vsyncadd [#allocation3], 4294967232 }
  0x39   :  { %799 = dma.done.wait [#allocation6], 1152  }
  0x3a   :  { %800 = vsyncadd [#allocation6], 4294966144 }
  0x3b   :  { %801 = dma.done.wait [#allocation9], 2048  }
  0x3c   :  { %802 = vsyncadd [#allocation9], 4294965248  ;;  %v812_v0 = vmov 0.0   ;;  %vm813_vm0 = vmmov 0   ;;  %v652_v1 = vld [vmem:[#allocation5] sm:$0xff]   ;;  %vm116_vm1 = vcmask 130048  }
  0x3d   :  { %576 = vmatprep.subr.bf16.mxu0 %v812_v0  ;;  %578 = vmatprep.mubr.msk.bf16.mxu0 %vm813_vm0, %v812_v0  ;;  %v100_v2 = vld [vmem:[#allocation2] sm:$0xf]  ;;  %v653_v3 = vld [vmem:[#allocation7 + $0x38] sm:$0xff]   ;;  %v655_v5 = vld [vmem:[#allocation7 + $0x28] sm:$0xff]   ;;  %s814_s16 = smov [#allocation11]  }
  0x3e   :  { %582 = vmatprep.subr.bf16.mxu1 %v812_v0  ;;  %598 = vmatprep.mubr.msk.bf16.mxu1 %vm813_vm0, %v812_v0  ;;  %v654_v4 = vld [vmem:[#allocation7 + $0x30] sm:$0xff]   ;;  %v656_v6 = vld [vmem:[#allocation7 + $0x20] sm:$0xff]   ;;  %v657_v7 = vld [vmem:[#allocation7 + $0x18] sm:$0xff]   ;;  %s506_s17 = sshll.u32 %s814_s16, 4  ;;  %s507_s17 = int_to_ptr.vmem [resolvable:$true] %s506_s17 }
  0x3f   :  { %577 = vmatpush3.bf16.msra.mxu0 %v652_v1  ;;  %583 = vmatpush3.bf16.msra.mxu1 %v653_v3  ;;  %v658_v8 = vld [vmem:[#allocation7 + $0x10] sm:$0xff]   ;;  %v659_v9 = vld [vmem:[#allocation7 + $0x8] sm:$0xff]   ;;  %v660_v10 = vld [vmem:[#allocation7] sm:$0xff]   ;;  %p782_p12 = scmp.lt.s32.totalorder %s507_s17, %s507_s17 }
  0x40   :  { %602 = vmatprep.subr.bf16.mxu0 %v812_v0  ;;  %584 = vmatprep.subr.bf16.mxu1 %v812_v0  ;;  %v661_v11 = vld [vmem:[#allocation8 + $0x38] sm:$0xff]   ;;  %v662_v12 = vld [vmem:[#allocation8 + $0x30] sm:$0xff]   ;;  %v663_v13 = vld [vmem:[#allocation8 + $0x28] sm:$0xff]  }
  0x41   :  { %v664_v14 = vld [vmem:[#allocation8 + $0x20] sm:$0xff]   ;;  %v665_v15 = vld [vmem:[#allocation8 + $0x18] sm:$0xff]   ;;  %v666_v16 = vld [vmem:[#allocation8 + $0x10] sm:$0xff]  }
  0x42   :  { %579 = vmatmul.mubr.msk.bf16.vlgmr.msra.gmra.mxu0 %vm116_vm1, %v100_v2  ;;  %v517_v17 = vld [vmem:[%s942_s2] ss:$0 sm:$0xff]  ;;  %v667_v25 = vld [vmem:[#allocation8 + $0x8] sm:$0xff]   ;;  %v668_v26 = vld [vmem:[#allocation8] sm:$0xff]  }
  0x43   :  { %618 = vmatprep.mubr.msk.bf16.mxu0 %vm813_vm0, %v812_v0  ;;  %585 = vmatpush3.bf16.msra.mxu1 %v654_v4  ;;  %v669_v27 = vld [vmem:[#allocation10 + $0x38] sm:$0xff]   ;;  %v670_v28 = vld [vmem:[#allocation10 + $0x30] sm:$0xff]   ;;  %v671_v29 = vld [vmem:[#allocation10 + $0x28] sm:$0xff]  }
  0x44   :  { %586 = vmatprep.subr.bf16.mxu1 %v812_v0  ;;  %603 = vmatpush3.bf16.msra.mxu0 %v661_v11  ;;  %v672_v30 = vld [vmem:[#allocation10 + $0x20] sm:$0xff]   ;;  %v673_v31 = vld [vmem:[#allocation10 + $0x18] sm:$0xff]   ;;  %v674_v32 = vld [vmem:[#allocation10 + $0x10] sm:$0xff]  }
  0x45   :  { %604 = vmatprep.subr.bf16.mxu0 %v812_v0  ;;  %v520_v33 = vld [vmem:[%s944_s4] ss:$0 sm:$0xff]  ;;  %v675_v41 = vld [vmem:[#allocation10 + $0x8] sm:$0xff]   ;;  %v676_v42 = vld [vmem:[#allocation10] sm:$0xff]  }
  0x46   :  { %v529_v43 = vld [vmem:[%s946_s6] ss:$0 sm:$0xff]  ;;  %s777_s6 = scalar_lea.vmem %s507_s17, 128 }
  0x47   :  { %587 = vmatpush3.bf16.msra.mxu1 %v655_v5  ;;  %v538_v51 = vld [vmem:[%s948_s8] ss:$0 sm:$0xff]  ;;  %p778_p11 = scmp.ne.s32.totalorder %s507_s17, %s777_s6  ;;  %p783_p13 = scmp.lt.s32.totalorder %s777_s6, %s777_s6 }
  0x48   :  { %588 = vmatprep.subr.bf16.mxu1 %v812_v0  ;;  %605 = vmatpush3.bf16.msra.mxu0 %v662_v12 }
  0x49   :  { %606 = vmatprep.subr.bf16.mxu0 %v812_v0  ;;  %p784_p0 = por %p783_p13, %p782_p12 }
  0x4b   :  { %589 = vmatpush3.bf16.msra.mxu1 %v656_v6  ;;  %p785_p1 = pnand %p784_p0, %p778_p11 }
  0x4c   :  { %590 = vmatprep.subr.bf16.mxu1 %v812_v0  ;;  %607 = vmatpush3.bf16.msra.mxu0 %v663_v13 }
  0x4d   :  { %608 = vmatprep.subr.bf16.mxu0 %v812_v0 }
  0x4f   :  { %591 = vmatpush3.bf16.msra.mxu1 %v657_v7 }
  0x50   :  { %592 = vmatprep.subr.bf16.mxu1 %v812_v0  ;;  %609 = vmatpush3.bf16.msra.mxu0 %v664_v14 }
  0x51   :  { %610 = vmatprep.subr.bf16.mxu0 %v812_v0 }
  0x53   :  { %593 = vmatpush3.bf16.msra.mxu1 %v658_v8 }
  0x54   :  { %594 = vmatprep.subr.bf16.mxu1 %v812_v0  ;;  %611 = vmatpush3.bf16.msra.mxu0 %v665_v15 }
  0x55   :  { %612 = vmatprep.subr.bf16.mxu0 %v812_v0 }
  0x57   :  { %595 = vmatpush3.bf16.msra.mxu1 %v659_v9 }
  0x58   :  { %596 = vmatprep.subr.bf16.mxu1 %v812_v0  ;;  %613 = vmatpush3.bf16.msra.mxu0 %v666_v16 }
  0x59   :  { %614 = vmatprep.subr.bf16.mxu0 %v812_v0 }
  0x5b   :  { %597 = vmatpush3.bf16.msra.mxu1 %v660_v10 }
  0x5c   :  { %622 = vmatprep.subr.bf16.mxu1 %v812_v0  ;;  %615 = vmatpush3.bf16.msra.mxu0 %v667_v25 }
  0x5d   :  { %616 = vmatprep.subr.bf16.mxu0 %v812_v0 }
  0x60   :  { %617 = vmatpush3.bf16.msra.mxu0 %v668_v26 }
 0x102   :  { %v154_v18 = vpop.f32.mrf.mxu0 }
 0x103   :  { %v155_v19 = vadd.f32 %v517_v17, %v154_v18 }
 0x104   :  { %v580_v20 = vpop.f32.mrf.mxu0 }
 0x105   :  { %v160_v21 = vmax.f32 %v155_v19, 0.0 }
 0x106   :  { %v157_v22 = vpop.f32.mrf.mxu0 }
 0x107   :  { %v161_v23 = vpack.c.bf16 %v160_v21, %v160_v21 }
 0x108   :  { %v581_v24 = vpop.f32.mrf.mxu0 }
 0x109   :  { %599 = vmatmul.mubr.bf16.vlgmr.msra.gmra.mxu1 %v161_v23 }
 0x10a   :  { %638 = vmatprep.mubr.msk.bf16.mxu1 %vm813_vm0, %v812_v0  ;;  %623 = vmatpush3.bf16.msra.mxu1 %v669_v27 }
 0x10b   :  { %624 = vmatprep.subr.bf16.mxu1 %v812_v0 }
 0x10e   :  { %625 = vmatpush3.bf16.msra.mxu1 %v670_v28 }
 0x10f   :  { %626 = vmatprep.subr.bf16.mxu1 %v812_v0 }
 0x112   :  { %627 = vmatpush3.bf16.msra.mxu1 %v671_v29 }
 0x113   :  { %628 = vmatprep.subr.bf16.mxu1 %v812_v0 }
 0x116   :  { %629 = vmatpush3.bf16.msra.mxu1 %v672_v30 }
 0x117   :  { %630 = vmatprep.subr.bf16.mxu1 %v812_v0 }
 0x11a   :  { %631 = vmatpush3.bf16.msra.mxu1 %v673_v31 }
 0x11b   :  { %632 = vmatprep.subr.bf16.mxu1 %v812_v0 }
 0x11e   :  { %633 = vmatpush3.bf16.msra.mxu1 %v674_v32 }
 0x11f   :  { %634 = vmatprep.subr.bf16.mxu1 %v812_v0 }
 0x122   :  { %635 = vmatpush3.bf16.msra.mxu1 %v675_v41 }
 0x123   :  { %636 = vmatprep.subr.bf16.mxu1 %v812_v0 }
 0x126   :  { %637 = vmatpush3.bf16.msra.mxu1 %v676_v42 }
 0x1c9   :  { %v267_v34 = vpop.f32.mrf.mxu1 }
 0x1ca   :  { %v268_v35 = vadd.f32 %v520_v33, %v267_v34 }
 0x1cb   :  { %v600_v36 = vpop.f32.mrf.mxu1 }
 0x1cc   :  { %v273_v37 = vmax.f32 %v268_v35, 0.0 }
 0x1cd   :  { %v270_v38 = vpop.f32.mrf.mxu1 }
 0x1ce   :  { %v274_v39 = vpack.c.bf16 %v273_v37, %v273_v37 }
 0x1cf   :  { %v601_v40 = vpop.f32.mrf.mxu1 }
 0x1d0   :  { %619 = vmatmul.mubr.bf16.vlgmr.msra.gmra.mxu0 %v274_v39 }
 0x290   :  { %v380_v44 = vpop.f32.mrf.mxu0 }
 0x291   :  { %v381_v45 = vadd.f32 %v529_v43, %v380_v44 }
 0x292   :  { %v620_v46 = vpop.f32.mrf.mxu0 }
 0x293   :  { %v386_v47 = vmax.f32 %v381_v45, 0.0 }
 0x294   :  { %v383_v48 = vpop.f32.mrf.mxu0 }
 0x295   :  { %v387_v49 = vpack.c.bf16 %v386_v47, %v386_v47 }
 0x296   :  { %v621_v50 = vpop.f32.mrf.mxu0 }
 0x297   :  { %639 = vmatmul.mubr.bf16.vlgmr.msra.gmra.mxu1 %v387_v49 }
 0x357   :  { %v493_v52 = vpop.f32.mrf.mxu1 }
 0x358   :  { %v494_v53 = vadd.f32 %v538_v51, %v493_v52 }
 0x359   :  { %v640_v54 = vpop.f32.mrf.mxu1 }
 0x35a   :  { %499 = vst [vmem:[#allocation11] sm:$0xff] %v494_v53 }
 0x35b   :  { %v496_v55 = vpop.f32.mrf.mxu1 }
 0x35c   :  { %788 = shalt.err (!%p785_p1)
}
 0x35d   :  { %509 = dma.vmem_to_hbm [thread:$0]  %s507_s17, 128, %s949_s9, [#allocation4]   ;;  %v641_v56 = vpop.f32.mrf.mxu1 }
 0x35e   :  { %803 = dma.done.wait [#allocation4], 128  }
 0x35f   :  { %804 = vsyncadd [#allocation4], 4294967168 }
 0x360   :  { %513 = vsyncpa [#allocation3], 1 }
 0x361   :  { %514 = vsyncpa [#allocation6], 1 }
 0x362   :  { %515 = vsyncpa [#allocation9], 1 }
 0x363   :  { %516 = vsyncpa [#allocation4], 1 }

</bundles_post_ra>
